<compile_context>
chip_gen: v5e
topology: v5e:2x2
jax: 0.10.0
libtpu: 0.0.40
codegen_flags: <defaults>
</compile_context>

<pallas_src>
import jax
import jax.numpy as jnp
from jax.experimental import pallas as pl
from jax.experimental.pallas import tpu as pltpu


def _pos_add_kernel(q_ref, pos_ref, o_ref):
    # q_ref: (tB, tL), pos_ref: (1, tL), o_ref: (tB, tL)
    o_ref[...] = q_ref[...] + pos_ref[...]   # broadcast over rows; pure VPU add


def _choose_tiles(B, L, itemsize):
    """Pick (tB, tL): lane-dense columns (multiple of 128), ~2 MiB tiles."""
    # Column tile: at most ~256 KiB per row, multiple of 128 lanes.
    max_cols = max(128, ((262144 // itemsize) // 128) * 128)
    tL = L if L <= max_cols else max_cols
    # Row tile: target ~2 MiB per (tB, tL) tile.
    target_bytes = 2 * 1024 * 1024
    tB = max(1, target_bytes // (tL * itemsize))
    if tB >= B:
        tB = B                       # full extent -> no sublane divisibility needed
    else:
        tB = max(8, (tB // 8) * 8)   # keep row tiles sublane-aligned
        if tB >= B:
            tB = B
    return tB, tL


def learn_positional_encoding(q, pos_weight):
    """q: (B, D, T) ; pos_weight: (T, D) with T == max_len == q_frm."""
    B, D, T = q.shape
    assert pos_weight.shape == (T, D), (pos_weight.shape, (T, D))
    L = D * T
    itemsize = jnp.dtype(q.dtype).itemsize

    # One-time layout plumbing in XLA (outside the kernel):
    #   pos: (T, D) -> (D, T) -> (1, D*T) ;  q: (B, D, T) -> (B, D*T)
    pos_flat = jnp.transpose(pos_weight, (1, 0)).astype(q.dtype).reshape(1, L)
    q_flat = q.reshape(B, L)

    tB, tL = _choose_tiles(B, L, itemsize)
    grid = (pl.cdiv(L, tL), pl.cdiv(B, tB))   # rows innermost: pos tile stays resident

    out_flat = pl.pallas_call(
        _pos_add_kernel,
        out_shape=jax.ShapeDtypeStruct((B, L), q.dtype),
        grid_spec=pltpu.PrefetchScalarGridSpec(
            num_scalar_prefetch=0,
            grid=grid,
            in_specs=[
                pl.BlockSpec((tB, tL), lambda j, i: (i, j)),   # q tile
                pl.BlockSpec((1, tL), lambda j, i: (0, j)),    # matching pos tile
            ],
            out_specs=pl.BlockSpec((tB, tL), lambda j, i: (i, j)),
        ),
        compiler_params=pltpu.CompilerParams(
            dimension_semantics=("parallel", "parallel"),
            vmem_limit_bytes=32 * 1024 * 1024,
        ),
        input_output_aliases={0: 0},   # write the result over q's HBM buffer
    )(q_flat, pos_flat)

    return out_flat.reshape(B, D, T)


if __name__ == "__main__":
    key = jax.random.PRNGKey(0)
    k_q, k_pos = jax.random.split(key)

    bsz, d_model, max_len = 2, 32, 64   # q_frm must equal max_len (module asserts this)

    q = jax.random.normal(k_q, (bsz, d_model, max_len), dtype=jnp.float32)
    # nn.init.uniform_ -> U[0, 1)
    pos_weight = jax.random.uniform(k_pos, (max_len, d_model), dtype=jnp.float32)

    # Reference in plain JAX (eval-mode dropout == identity), computed up front.
    ref = q + jnp.transpose(pos_weight, (1, 0))[None, :, :]
    ref = jax.block_until_ready(ref)

    out = learn_positional_encoding(q, pos_weight)
    out = jax.block_until_ready(out)

    assert out.shape == (bsz, d_model, max_len)
    assert jnp.allclose(out, ref, atol=1e-6), float(jnp.max(jnp.abs(out - ref)))

    print("KERNEL_OK")
</pallas_src>

<mosaic_0001>
module attributes {stable_mosaic.version = 11 : i64} {
  func.func @_pos_add_kernel(%arg0: i32, %arg1: i32, %arg2: memref<2x2048xf32, #tpu.memory_space<vmem>>, %arg3: memref<1x2048xf32, #tpu.memory_space<vmem>>, %arg4: memref<2x2048xf32, #tpu.memory_space<vmem>>) attributes {dimension_semantics = [#tpu.dimension_semantics<parallel>, #tpu.dimension_semantics<parallel>], iteration_bounds = array<i64: 1, 1>, scalar_prefetch = 0 : i64, scratch_operands = 0 : i64, tpu.core_type = #tpu.core_type<tc>, window_params = [{transform_indices = @transform_0, window_bounds = array<i64: 2, 2048>}, {transform_indices = @transform_1, window_bounds = array<i64: 1, 2048>}, {transform_indices = @transform_2, window_bounds = array<i64: 2, 2048>}]} {
    %c0 = arith.constant 0 : index
    %c0_0 = arith.constant 0 : index
    %0 = vector.load %arg2[%c0, %c0_0] : memref<2x2048xf32, #tpu.memory_space<vmem>>, vector<2x2048xf32>
    %c0_1 = arith.constant 0 : index
    %c0_2 = arith.constant 0 : index
    %1 = vector.load %arg3[%c0_1, %c0_2] : memref<1x2048xf32, #tpu.memory_space<vmem>>, vector<1x2048xf32>
    %2 = vector.broadcast %1 : vector<1x2048xf32> to vector<2x2048xf32>
    %3 = arith.addf %0, %2 : vector<2x2048xf32>
    %c0_3 = arith.constant 0 : index
    %c0_4 = arith.constant 0 : index
    %4 = vector.load %arg4[%c0_3, %c0_4] : memref<2x2048xf32, #tpu.memory_space<vmem>>, vector<2x2048xf32>
    tpu.vector_store %arg4[%c0_3, %c0_4], %3 {strides = array<i32>} : memref<2x2048xf32, #tpu.memory_space<vmem>>, vector<2x2048xf32>,
    return
  }
  func.func @transform_0(%arg0: i32, %arg1: i32) -> (i32, i32) {
    %c0_i32 = arith.constant 0 : i32
    return %arg1, %arg0 : i32, i32
  }
  func.func @transform_1(%arg0: i32, %arg1: i32) -> (i32, i32) {
    %c0_i32 = arith.constant 0 : i32
    %c0_i32_0 = arith.constant 0 : i32
    return %c0_i32, %arg0 : i32, i32
  }
  func.func @transform_2(%arg0: i32, %arg1: i32) -> (i32, i32) {
    %c0_i32 = arith.constant 0 : i32
    return %arg1, %arg0 : i32, i32
  }
}

</mosaic_0001>

<bundles_post_ra>
// kernel: tpu_custom_call.1
= control target key start
LH: loop header
LB: loop body
LE: loop exit
PB: predicated region body
PF: predicated region fallthrough
CT: control target
= control target key end

     0   :  { %7 = vsyncpa [#allocation3], 0  ;;  %s201_s0 = inlined_call_operand.hbm [shape: f32[2,2048], index: 0, kind: input, shape index: {}, may-alias: {0,2}]   ;;  %s202_s1 = inlined_call_operand.vmem [shape: f32[1,2048], index: 1, kind: input, shape index: {}]   ;;  %s203_s2 = inlined_call_operand.hbm [shape: f32[2,2048], index: 2, kind: output, shape index: {}, may-alias: {0,2}]  }
   0x1   :  { %8 = vsyncpa [#allocation4], 0  ;;  %s14_s11 = sshll.u32 %s201_s0, 4  ;;  %s160_s12 = smov [#allocation2]   ;;  %s15_s11 = int_to_ptr.hbm [resolvable:$true] %s14_s11 }
   0x2   :  { %s16_s13 = sshll.u32 %s160_s12, 4  ;;  %s17_s13 = int_to_ptr.vmem [resolvable:$true] %s16_s13 }
   0x3   :  { %19 = dma.hbm_to_vmem [thread:$0]  %s15_s11, 512, %s17_s13, [#allocation3]  }
   0x4   :  { %156 = dma.done.wait [#allocation3], 512  }
   0x5   :  { %157 = vsyncadd [#allocation3], 4294966784  ;;  %v30_v0 = vld [vmem:[%s202_s1] sm:$0xff]  ;;  %vm62_vm0 = vcmask 1041408   ;;  %vm64_vm1 = vcmask 1045508   ;;  %vm66_vm2 = vcmask 1043456  }
   0x6   :  { %v34_v1 = vperm.slane %v30_v0, 0  ;;  %v35_v2 = vperm.slane %v30_v0, 1  ;;  %v36_v3 = vperm.slane %v30_v0, 2  ;;  %v37_v4 = vperm.slane %v30_v0, 3  ;;  %v31_v5 = vld [vmem:[%s202_s1 + $0x8] sm:$0xff]  ;;  %v26_v14 = vld [vmem:[#allocation2] sm:$0xff] }
   0x7   :  { %v38_v6 = vperm.slane %v30_v0, 4  ;;  %v39_v7 = vperm.slane %v30_v0, 5  ;;  %v40_v8 = vperm.slane %v30_v0, 6  ;;  %v41_v9 = vperm.slane %v30_v0, 7  ;;  %v27_v21 = vld [vmem:[#allocation2 + $0x8] sm:$0xff]  ;;  %v28_v33 = vld [vmem:[#allocation2 + $0x10] sm:$0xff] }
   0x8   :  { %v50_v10 = vrot.slane %v35_v2, 6  ;;  %v51_v11 = vrot.slane %v36_v3, 4  ;;  %v52_v12 = vrot.slane %v37_v4, 2  ;;  %v42_v13 = vperm.slane %v31_v5, 0  ;;  %v29_v45 = vld [vmem:[#allocation2 + $0x18] sm:$0xff]  ;;  %s161_s1 = smov [#allocation5]  }
   0x9   :  { %v53_v15 = vrot.slane %v39_v7, 6  ;;  %v54_v16 = vrot.slane %v40_v8, 4  ;;  %v55_v17 = vrot.slane %v41_v9, 2  ;;  %v43_v18 = vperm.slane %v31_v5, 1  ;;  %s94_s17 = sshll.u32 %s161_s1, 4  ;;  %s96_s20 = sshll.u32 %s203_s2, 4  ;;  %s95_s17 = int_to_ptr.vmem [resolvable:$true] %s94_s17  ;;  %s97_s20 = int_to_ptr.hbm [resolvable:$true] %s96_s20 }
   0xa   :  { %v63_v19 = vsel %vm62_vm0, %v34_v1, %v50_v10  ;;  %v65_v20 = vsel %vm64_vm1, %v51_v11, %v52_v12  ;;  %v44_v22 = vperm.slane %v31_v5, 2  ;;  %v45_v23 = vperm.slane %v31_v5, 3 }
   0xb   :  { %v67_v24 = vsel %vm66_vm2, %v63_v19, %v65_v20  ;;  %v68_v25 = vsel %vm62_vm0, %v38_v6, %v53_v15  ;;  %v69_v26 = vsel %vm64_vm1, %v54_v16, %v55_v17  ;;  %v56_v27 = vrot.slane %v43_v18, 6 }
   0xc   :  { %v81_v28 = vadd.f32 %v67_v24, %v26_v14  ;;  %v70_v29 = vsel %vm66_vm2, %v68_v25, %v69_v26  ;;  %v57_v30 = vrot.slane %v44_v22, 4  ;;  %v58_v31 = vrot.slane %v45_v23, 2 }
   0xd   :  { %v82_v32 = vadd.f32 %v70_v29, %v27_v21  ;;  %v71_v34 = vsel %vm62_vm0, %v42_v13, %v56_v27  ;;  %v46_v35 = vperm.slane %v31_v5, 4  ;;  %v47_v36 = vperm.slane %v31_v5, 5 }
   0xe   :  { %85 = vst [vmem:[#allocation5] sm:$0xff] %v81_v28  ;;  %v72_v37 = vsel %vm64_vm1, %v57_v30, %v58_v31  ;;  %v48_v38 = vperm.slane %v31_v5, 6  ;;  %v49_v39 = vperm.slane %v31_v5, 7 }
   0xf   :  { %86 = vst [vmem:[#allocation5 + $0x8] sm:$0xff] %v82_v32  ;;  %v73_v40 = vsel %vm66_vm2, %v71_v34, %v72_v37  ;;  %v59_v41 = vrot.slane %v47_v36, 6 }
  0x10   :  { %v83_v42 = vadd.f32 %v73_v40, %v28_v33  ;;  %v60_v43 = vrot.slane %v48_v38, 4  ;;  %v61_v44 = vrot.slane %v49_v39, 2 }
  0x11   :  { %v74_v46 = vsel %vm62_vm0, %v46_v35, %v59_v41 }
  0x12   :  { %87 = vst [vmem:[#allocation5 + $0x10] sm:$0xff] %v83_v42  ;;  %v75_v47 = vsel %vm64_vm1, %v60_v43, %v61_v44 }
  0x13   :  { %v76_v48 = vsel %vm66_vm2, %v74_v46, %v75_v47 }
  0x14   :  { %v84_v49 = vadd.f32 %v76_v48, %v29_v45 }
  0x16   :  { %88 = vst [vmem:[#allocation5 + $0x18] sm:$0xff] %v84_v49 }
  0x17   :  { %99 = dma.vmem_to_hbm [thread:$0]  %s95_s17, 512, %s97_s20, [#allocation4]  }
  0x18   :  { %158 = dma.done.wait [#allocation4], 512  }
  0x19   :  { %159 = vsyncadd [#allocation4], 4294966784 }
  0x1a   :  { %104 = vsyncpa [#allocation3], 1 }
  0x1b   :  { %105 = vsyncpa [#allocation4], 1 }

</bundles_post_ra>
